<compile_context>
chip_gen: v7x
topology: tpu7x:2x2x1
jax: 0.10.0
libtpu: 0.0.40
codegen_flags: <defaults>
</compile_context>

<pallas_src>
import functools

import jax
import jax.numpy as jnp
from jax.experimental import pallas as pl
from jax.experimental.pallas import tpu as pltpu

LANE = 128      # vreg lane width
SUBLANE = 8     # vreg sublane count (f32)
MAX_TILE_B = 2048


def _round_up(x, m):
    return (x + m - 1) // m * m


def _tanh_in_bf16():
    """bf16 tanh is a perf knob only (Mosaic upcasts if the EUP lacks bf16); keep f32 on v5e
    and older where the VPU/EUP have no bf16 path."""
    try:
        kind = jax.devices()[0].device_kind.lower()
    except Exception:
        return False
    return not any(t in kind for t in ("v2", "v3", "v4", "v5"))


def _choose_tile_b(batch):
    """Batch tile: >=2 tiles when batch >= 16 (v7x megacore), capped so per-step VMEM stays
    small; grid uses pl.cdiv so no rows are wasted."""
    if batch <= SUBLANE:
        return batch                      # full-dim block (allowed even if < 8)
    tile = _round_up(pl.cdiv(batch, 2), SUBLANE)
    return min(tile, MAX_TILE_B)


def _mlp_fused_kernel(x_ref, w_ref, b_ref, o_ref, *, n_layers, d_in, d_out, tanh_in_bf16):
    """x_ref: (TILE_B, d_in)   w_ref: (n_layers, D_pad, D_pad) bf16
       b_ref: (n_layers, 1, D_pad) f32   o_ref: (TILE_B, d_out) f32."""
    h = x_ref[...].astype(jnp.bfloat16)                       # bf16 operands for the MXU
    for i in range(n_layers):                                  # tiny static unroll
        # Layer 0 contracts only the real K = d_in (x arrives unpadded); zero-padded weight
        # rows/columns keep every padding lane of h exactly zero for all later layers.
        w_i = w_ref[i, 0:d_in, :] if i == 0 else w_ref[i]
        h = jnp.dot(h, w_i, preferred_element_type=jnp.float32) + b_ref[i]  # MXU + f32 bias
        if i < n_layers - 1:
            if tanh_in_bf16:
                h = jnp.tanh(h.astype(jnp.bfloat16))           # EUP bf16 (v6e/v7x)
            else:
                h = jnp.tanh(h).astype(jnp.bfloat16)           # EUP f32 (v5e-safe)
    # Only the real d_out lanes are stored (narrow block = masked vst, but no extra
    # XLA slice kernel and 8x fewer output HBM bytes).
    o_ref[...] = h[:, 0:d_out].astype(o_ref.dtype)


def init_params(key, layers, gain):
    """Mimic torch.nn.Linear default init U(-1/sqrt(fan_in), 1/sqrt(fan_in)),
    then weight *= gain (as in Perceptron.__init__). Returns PyTorch-layout f32 params."""
    params = []
    for l_in, l_out in zip(layers[:-1], layers[1:]):
        key, kw, kb = jax.random.split(key, 3)
        bound = 1.0 / (l_in ** 0.5)
        w = jax.random.uniform(kw, (l_out, l_in), jnp.float32, -bound, bound) * gain
        b = jax.random.uniform(kb, (l_out,), jnp.float32, -bound, bound)
        params.append((w, b))
    return params


def pack_params(params):
    """One-time prep (hoisted out of forward): transpose weights to [in, out], zero-pad every
    feature dim to a multiple of 128, stack, and cast weights to bf16 for the MXU
    (biases stay f32 - they are added to the f32 accumulator)."""
    dims = [params[0][0].shape[1]] + [w.shape[0] for (w, _) in params]
    d_pad = _round_up(max(dims), LANE)
    n = len(params)
    w_stack = jnp.zeros((n, d_pad, d_pad), jnp.bfloat16)
    b_stack = jnp.zeros((n, 1, d_pad), jnp.float32)
    for i, (w, b) in enumerate(params):
        d_o, d_i = w.shape
        w_stack = w_stack.at[i, :d_i, :d_o].set(w.T.astype(jnp.bfloat16))  # pre-transposed
        b_stack = b_stack.at[i, 0, :d_o].set(b)
    return w_stack, b_stack


def perceptron_forward(x, w_stack, b_stack, d_in, d_out):
    """Fused forward: all layers in one pallas_call. x: [B, d_in] f32 (unpadded)."""
    batch = x.shape[0]
    n_layers, d_pad, _ = w_stack.shape

    tile_b = _choose_tile_b(batch)
    grid = (pl.cdiv(batch, tile_b),)       # partial last tile is masked; no wasted rows

    kernel = functools.partial(
        _mlp_fused_kernel, n_layers=n_layers, d_in=d_in, d_out=d_out,
        tanh_in_bf16=_tanh_in_bf16())

    # VMEM budget: whole weight slab (x2 buffers) + x/out blocks (x2) + live activations.
    wb_bytes = (w_stack.size * w_stack.dtype.itemsize
                + b_stack.size * b_stack.dtype.itemsize)
    est = 2 * wb_bytes + 2 * tile_b * (d_in + d_out) * 4 + 4 * tile_b * d_pad * 4
    compiler_kwargs = dict(dimension_semantics=("parallel",))   # batch tiles across TCs (v7x)
    if est > 32 * 1024 * 1024:
        # TODO(synk): for much larger hidden dims, add a layer/K grid axis (or emit_pipeline
        # over layers) instead of keeping the whole weight stack VMEM-resident (v7x: 64 MiB).
        compiler_kwargs["vmem_limit_bytes"] = min(int(est * 1.25), 60 * 1024 * 1024)

    out = pl.pallas_call(
        kernel,
        out_shape=jax.ShapeDtypeStruct((batch, d_out), jnp.float32),
        grid_spec=pltpu.PrefetchScalarGridSpec(
            num_scalar_prefetch=0,
            grid=grid,
            in_specs=[
                pl.BlockSpec((tile_b, d_in), lambda i: (i, 0)),
                # Constant index_map -> Pallas fetches the weight slab once, no re-DMA.
                pl.BlockSpec((n_layers, d_pad, d_pad), lambda i: (0, 0, 0)),
                pl.BlockSpec((n_layers, 1, d_pad), lambda i: (0, 0, 0)),
            ],
            out_specs=pl.BlockSpec((tile_b, d_out), lambda i: (i, 0)),
        ),
        compiler_params=pltpu.CompilerParams(**compiler_kwargs),
    )(x, w_stack, b_stack)
    return out


if __name__ == "__main__":
    # Perceptron(layers=[32, 64, 64, 16], act_name='tanh'); gain('tanh') = 5/3
    layers = [32, 64, 64, 16]
    gain = 5.0 / 3.0
    batch = 8

    key = jax.random.PRNGKey(0)
    key, kx = jax.random.split(key)
    x = jax.random.normal(kx, (batch, layers[0]), jnp.float32)

    params = init_params(key, layers, gain)
    w_stack, b_stack = pack_params(params)          # one-time pack (hoisted out of forward)

    out = perceptron_forward(x, w_stack, b_stack, layers[0], layers[-1])
    out = jax.block_until_ready(out)
    assert out.shape == (batch, layers[-1])

    # Reference 1: matched precision (bf16 operands, f32 accumulation, f32 bias) -> tight.
    ref = x
    for i, (w, b) in enumerate(params):
        z = jnp.dot(ref.astype(jnp.bfloat16), w.T.astype(jnp.bfloat16),
                    preferred_element_type=jnp.float32) + b
        ref = jnp.tanh(z) if i < len(params) - 1 else z
    assert jnp.allclose(out, ref, atol=2e-2, rtol=2e-2), (
        f"mismatch vs bf16 reference: max abs err {jnp.max(jnp.abs(out - ref))}")

    # Reference 2: pure f32 (PyTorch semantics) -> loose, bounds the bf16 quantization error.
    ref32 = x
    for i, (w, b) in enumerate(params):
        ref32 = ref32 @ w.T + b
        if i < len(params) - 1:
            ref32 = jnp.tanh(ref32)
    assert jnp.allclose(out, ref32, atol=1e-1, rtol=1e-1), (
        f"mismatch vs f32 reference: max abs err {jnp.max(jnp.abs(out - ref32))}")

    print("KERNEL_OK")
</pallas_src>

<mosaic_0001>
module attributes {stable_mosaic.version = 11 : i64} {
  func.func @_mlp_fused_kernel(%arg0: i32, %arg1: memref<8x32xf32, #tpu.memory_space<vmem>>, %arg2: memref<3x128x128xbf16, #tpu.memory_space<vmem>>, %arg3: memref<3x1x128xf32, #tpu.memory_space<vmem>>, %arg4: memref<8x16xf32, #tpu.memory_space<vmem>>) attributes {dimension_semantics = [#tpu.dimension_semantics<parallel>], iteration_bounds = array<i64: 1>, scalar_prefetch = 0 : i64, scratch_operands = 0 : i64, tpu.core_type = #tpu.core_type<tc>, window_params = [{transform_indices = @transform_0, window_bounds = array<i64: 8, 32>}, {pipeline_mode = #tpu.pipeline_mode<synchronous>, transform_indices = @transform_1, window_bounds = array<i64: 3, 128, 128>}, {pipeline_mode = #tpu.pipeline_mode<synchronous>, transform_indices = @transform_2, window_bounds = array<i64: 3, 1, 128>}, {transform_indices = @transform_3, window_bounds = array<i64: 8, 16>}]} {
    %c0 = arith.constant 0 : index
    %c0_0 = arith.constant 0 : index
    %0 = vector.load %arg1[%c0, %c0_0] : memref<8x32xf32, #tpu.memory_space<vmem>>, vector<8x32xf32>
    %1 = arith.truncf %0 : vector<8x32xf32> to vector<8x32xbf16>
    %c0_1 = arith.constant 0 : index
    %c0_2 = arith.constant 0 : index
    %c0_3 = arith.constant 0 : index
    %2 = vector.load %arg2[%c0_1, %c0_2, %c0_3] : memref<3x128x128xbf16, #tpu.memory_space<vmem>>, vector<1x32x128xbf16>
    %3 = vector.shape_cast %2 : vector<1x32x128xbf16> to vector<32x128xbf16>
    %cst = arith.constant dense<0.000000e+00> : vector<8x128xf32>
    %4 = tpu.matmul %1, %3, %cst {dimension_numbers = #tpu.dot_dimension_numbers<[1], [0], [0], [1], [0, 0, 1, 1], [], []>} : vector<8x32xbf16>, vector<32x128xbf16>, vector<8x128xf32> -> vector<8x128xf32>
    %c0_4 = arith.constant 0 : index
    %c0_5 = arith.constant 0 : index
    %c0_6 = arith.constant 0 : index
    %5 = vector.load %arg3[%c0_4, %c0_5, %c0_6] : memref<3x1x128xf32, #tpu.memory_space<vmem>>, vector<1x1x128xf32>
    %6 = vector.shape_cast %5 : vector<1x1x128xf32> to vector<1x128xf32>
    %7 = vector.broadcast %6 : vector<1x128xf32> to vector<8x128xf32>
    %8 = arith.addf %4, %7 : vector<8x128xf32>
    %9 = arith.truncf %8 : vector<8x128xf32> to vector<8x128xbf16>
    %10 = math.tanh %9 : vector<8x128xbf16>
    %c1 = arith.constant 1 : index
    %c0_7 = arith.constant 0 : index
    %c0_8 = arith.constant 0 : index
    %11 = vector.load %arg2[%c1, %c0_7, %c0_8] : memref<3x128x128xbf16, #tpu.memory_space<vmem>>, vector<1x128x128xbf16>
    %12 = vector.shape_cast %11 : vector<1x128x128xbf16> to vector<128x128xbf16>
    %cst_9 = arith.constant dense<0.000000e+00> : vector<8x128xf32>
    %13 = tpu.matmul %10, %12, %cst_9 {dimension_numbers = #tpu.dot_dimension_numbers<[1], [0], [0], [1], [0, 0, 1, 1], [], []>} : vector<8x128xbf16>, vector<128x128xbf16>, vector<8x128xf32> -> vector<8x128xf32>
    %c1_10 = arith.constant 1 : index
    %c0_11 = arith.constant 0 : index
    %c0_12 = arith.constant 0 : index
    %14 = vector.load %arg3[%c1_10, %c0_11, %c0_12] : memref<3x1x128xf32, #tpu.memory_space<vmem>>, vector<1x1x128xf32>
    %15 = vector.shape_cast %14 : vector<1x1x128xf32> to vector<1x128xf32>
    %16 = vector.broadcast %15 : vector<1x128xf32> to vector<8x128xf32>
    %17 = arith.addf %13, %16 : vector<8x128xf32>
    %18 = arith.truncf %17 : vector<8x128xf32> to vector<8x128xbf16>
    %19 = math.tanh %18 : vector<8x128xbf16>
    %c2 = arith.constant 2 : index
    %c0_13 = arith.constant 0 : index
    %c0_14 = arith.constant 0 : index
    %20 = vector.load %arg2[%c2, %c0_13, %c0_14] : memref<3x128x128xbf16, #tpu.memory_space<vmem>>, vector<1x128x128xbf16>
    %21 = vector.shape_cast %20 : vector<1x128x128xbf16> to vector<128x128xbf16>
    %cst_15 = arith.constant dense<0.000000e+00> : vector<8x128xf32>
    %22 = tpu.matmul %19, %21, %cst_15 {dimension_numbers = #tpu.dot_dimension_numbers<[1], [0], [0], [1], [0, 0, 1, 1], [], []>} : vector<8x128xbf16>, vector<128x128xbf16>, vector<8x128xf32> -> vector<8x128xf32>
    %c2_16 = arith.constant 2 : index
    %c0_17 = arith.constant 0 : index
    %c0_18 = arith.constant 0 : index
    %23 = vector.load %arg3[%c2_16, %c0_17, %c0_18] : memref<3x1x128xf32, #tpu.memory_space<vmem>>, vector<1x1x128xf32>
    %24 = vector.shape_cast %23 : vector<1x1x128xf32> to vector<1x128xf32>
    %25 = vector.broadcast %24 : vector<1x128xf32> to vector<8x128xf32>
    %26 = arith.addf %22, %25 : vector<8x128xf32>
    %27 = vector.extract_strided_slice %26 {offsets = [0, 0], sizes = [8, 16], strides = [1, 1]} : vector<8x128xf32> to vector<8x16xf32>
    %c0_19 = arith.constant 0 : index
    %c0_20 = arith.constant 0 : index
    %28 = vector.load %arg4[%c0_19, %c0_20] : memref<8x16xf32, #tpu.memory_space<vmem>>, vector<8x16xf32>
    tpu.vector_store %arg4[%c0_19, %c0_20], %27 {strides = array<i32>} : memref<8x16xf32, #tpu.memory_space<vmem>>, vector<8x16xf32>,
    return
  }
  func.func @transform_0(%arg0: i32) -> (i32, i32) {
    %c0_i32 = arith.constant 0 : i32
    %c0_i32_0 = arith.constant 0 : i32
    return %arg0, %c0_i32 : i32, i32
  }
  func.func @transform_1(%arg0: i32) -> (i32, i32, i32) {
    %c0_i32 = arith.constant 0 : i32
    %c0_i32_0 = arith.constant 0 : i32
    %c0_i32_1 = arith.constant 0 : i32
    %c0_i32_2 = arith.constant 0 : i32
    return %c0_i32, %c0_i32_0, %c0_i32_1 : i32, i32, i32
  }
  func.func @transform_2(%arg0: i32) -> (i32, i32, i32) {
    %c0_i32 = arith.constant 0 : i32
    %c0_i32_0 = arith.constant 0 : i32
    %c0_i32_1 = arith.constant 0 : i32
    %c0_i32_2 = arith.constant 0 : i32
    return %c0_i32, %c0_i32_0, %c0_i32_1 : i32, i32, i32
  }
  func.func @transform_3(%arg0: i32) -> (i32, i32) {
    %c0_i32 = arith.constant 0 : i32
    %c0_i32_0 = arith.constant 0 : i32
    return %arg0, %c0_i32 : i32, i32
  }
}

</mosaic_0001>

<bundles_post_ra>
// kernel: tpu_custom_call.1
= control target key start
LH: loop header
LB: loop body
LE: loop exit
PB: predicated region body
PF: predicated region fallthrough
CT: control target
= control target key end

     0   :  { %8 = vsyncpa [#allocation3], 0  ;;  %s656_s0 = inlined_call_operand.hbm [shape: f32[8,32], index: 0, kind: input, shape index: {}]   ;;  %s657_s1 = inlined_call_operand.hbm [shape: bf16[3,128,128], index: 1, kind: input, shape index: {}]   ;;  %s658_s2 = inlined_call_operand.vmem [shape: f32[3,1,128], index: 2, kind: input, shape index: {}]   ;;  %s659_s3 = inlined_call_operand.hbm [shape: f32[8,16], index: 3, kind: output, shape index: {}]  }
   0x1   :  { %9 = vsyncpa [#allocation6], 0 }
   0x2   :  { %10 = vsyncpa [#allocation4], 0  ;;  %s553_s12 = smov [#allocation2]   ;;  %s554_s14 = smov [#allocation5]  }
   0x3   :  { %s17_s13 = sshll.u32 %s553_s12, 4  ;;  %s26_s15 = sshll.u32 %s554_s14, 4  ;;  %s18_s13 = int_to_ptr.vmem [resolvable:$true] %s17_s13  ;;  %s580_s15 = int_to_ptr.vmem [resolvable:$true] %s26_s15 }
   0x4   :  { %s481_s18 = scalar_lea.hbm %s656_s0, 128 }
   0x5   :  { %p482_p0 = scmp.ne.s32.totalorder %s656_s0, %s481_s18  ;;  %p485_p1 = scmp.lt.u32.totalorder %s481_s18, %s656_s0 }
   0x7   :  { %p487_p2 = pnand %p485_p1, %p482_p0 }
   0x9   :  { %490 = shalt.err (!%p487_p2)
}
   0xa   :  { %s491_s23 = scalar_lea.vmem %s18_s13, 128  ;;  %p496_p4 = scmp.lt.s32.totalorder %s18_s13, %s18_s13 }
   0xb   :  { %p492_p3 = scmp.ne.s32.totalorder %s18_s13, %s491_s23  ;;  %p497_p5 = scmp.lt.s32.totalorder %s491_s23, %s491_s23 }
   0xd   :  { %p498_p6 = por %p497_p5, %p496_p4 }
   0xf   :  { %p499_p7 = pnand %p498_p6, %p492_p3 }
  0x11   :  { %502 = shalt.err (!%p499_p7)
}
  0x12   :  { %20 = dma.hbm_to_vmem [thread:$0]  %s656_s0, 128, %s18_s13, [#allocation3]  }
  0x13   :  { %s503_s28 = scalar_lea.hbm %s657_s1, 3072 }
  0x14   :  { %p504_p8 = scmp.ne.s32.totalorder %s657_s1, %s503_s28  ;;  %p507_p9 = scmp.lt.u32.totalorder %s503_s28, %s657_s1 }
  0x16   :  { %p509_p10 = pnand %p507_p9, %p504_p8 }
  0x18   :  { %512 = shalt.err (!%p509_p10)
}
  0x19   :  { %s513_s6 = scalar_lea.vmem %s580_s15, 3072  ;;  %p518_p12 = scmp.lt.s32.totalorder %s580_s15, %s580_s15 }
  0x1a   :  { %p514_p11 = scmp.ne.s32.totalorder %s580_s15, %s513_s6  ;;  %p519_p13 = scmp.lt.s32.totalorder %s513_s6, %s513_s6 }
  0x1c   :  { %p520_p0 = por %p519_p13, %p518_p12 }
  0x1e   :  { %p521_p1 = pnand %p520_p0, %p514_p11 }
  0x20   :  { %524 = shalt.err (!%p521_p1)
}
  0x21   :  { %s555_s0 = smov 64   ;;  %s556_s7 = smov 4  }
  0x22   :  { %32 = dma.hbm_to_vmem [thread:$0]  %s657_s1, 3072, %s580_s15, [#allocation6], %s555_s0, %s555_s0, %s556_s7  }
  0x23   :  { %547 = dma.done.wait [#allocation3], 128  }
  0x24   :  { %548 = vsyncadd [#allocation3], 4294967168 }
  0x25   :  { %549 = dma.done.wait [#allocation6], 3072  }
  0x26   :  { %550 = vsyncadd [#allocation6], 4294964224  ;;  %v557_v0 = vmov 0.0   ;;  %vm558_vm0 = vmmov 0   ;;  %v459_v1 = vld [vmem:[#allocation5] sm:$0xff]   ;;  %v460_v2 = vld [vmem:[#allocation5 + $0x8] sm:$0xff]  }
  0x27   :  { %404 = vmatprep.subr.bf16.mxu0 %v557_v0  ;;  %408 = vmatprep.mubr.msk.bf16.mxu0 %vm558_vm0, %v557_v0  ;;  %v42_v3 = vld [vmem:[#allocation2] sm:$0xff]  ;;  %v461_v4 = vld [vmem:[#allocation5 + $0x40] sm:$0xff]   ;;  %v462_v6 = vld [vmem:[#allocation5 + $0x48] sm:$0xff]   ;;  %vm67_vm1 = vcmask 261120   ;;  %s559_s15 = smov [#allocation7]   ;;  %vm341_vm2 = vcmask 130048  }
  0x28   :  { %412 = vmatprep.subr.bf16.mxu1 %v557_v0  ;;  %428 = vmatprep.mubr.msk.bf16.mxu1 %vm558_vm0, %v557_v0  ;;  %v43_v5 = vpack.c.bf16 %v42_v3, %v42_v3  ;;  %v463_v7 = vld [vmem:[#allocation5 + $0x50] sm:$0xff]   ;;  %v464_v8 = vld [vmem:[#allocation5 + $0x58] sm:$0xff]   ;;  %v465_v9 = vld [vmem:[#allocation5 + $0x60] sm:$0xff]   ;;  %s349_s16 = sshll.u32 %s559_s15, 4  ;;  %s350_s16 = int_to_ptr.vmem [resolvable:$true] %s349_s16 }
  0x29   :  { %405 = vmatpush3.bf16.msra.mxu0 %v459_v1  ;;  %413 = vmatpush3.bf16.msra.mxu1 %v461_v4  ;;  %v466_v10 = vld [vmem:[#allocation5 + $0x68] sm:$0xff]   ;;  %v467_v11 = vld [vmem:[#allocation5 + $0x70] sm:$0xff]   ;;  %v468_v12 = vld [vmem:[#allocation5 + $0x78] sm:$0xff]   ;;  %s525_s17 = scalar_lea.vmem %s350_s16, 128  ;;  %p530_p3 = scmp.lt.s32.totalorder %s350_s16, %s350_s16 }
  0x2a   :  { %406 = vmatprep.subr.bf16.mxu0 %v557_v0  ;;  %414 = vmatprep.subr.bf16.mxu1 %v557_v0  ;;  %v469_v13 = vld [vmem:[#allocation5 + $0x80] sm:$0xff]   ;;  %v470_v14 = vld [vmem:[#allocation5 + $0x88] sm:$0xff]   ;;  %v471_v15 = vld [vmem:[#allocation5 + $0x90] sm:$0xff]   ;;  %p526_p2 = scmp.ne.s32.totalorder %s350_s16, %s525_s17  ;;  %p531_p4 = scmp.lt.s32.totalorder %s525_s17, %s525_s17 }
  0x2b   :  { %v472_v16 = vld [vmem:[#allocation5 + $0x98] sm:$0xff]   ;;  %v473_v25 = vld [vmem:[#allocation5 + $0xa0] sm:$0xff]   ;;  %v474_v26 = vld [vmem:[#allocation5 + $0xa8] sm:$0xff]  }
  0x2c   :  { %v359_v17 = vld [vmem:[%s658_s2] ss:$0 sm:$0xff]  ;;  %v475_v27 = vld [vmem:[#allocation5 + $0xb0] sm:$0xff]   ;;  %v364_v29 = vld [vmem:[%s658_s2 + $0x1] ss:$0 sm:$0xff]  ;;  %p532_p5 = por %p531_p4, %p530_p3 }
  0x2d   :  { %407 = vmatpush3.bf16.msra.mxu0 %v460_v2  ;;  %415 = vmatpush3.bf16.msra.mxu1 %v462_v6  ;;  %v476_v28 = vld [vmem:[#allocation5 + $0xb8] sm:$0xff]  }
  0x2e   :  { %432 = vmatprep.subr.bf16.mxu0 %v557_v0  ;;  %416 = vmatprep.subr.bf16.mxu1 %v557_v0  ;;  %v374_v37 = vld [vmem:[%s658_s2 + $0x2] ss:$0 sm:$0xff]  ;;  %p533_p6 = pnand %p532_p5, %p526_p2 }
  0x30   :  { %409 = vmatmul.mubr.msk.bf16.vlgmr.msra.gmra.mrb[0].mxu0 %vm67_vm1, %v43_v5 }
  0x31   :  { %448 = vmatprep.mubr.msk.bf16.mxu0 %vm558_vm0, %v557_v0  ;;  %417 = vmatpush3.bf16.msra.mxu1 %v463_v7 }
  0x32   :  { %418 = vmatprep.subr.bf16.mxu1 %v557_v0  ;;  %433 = vmatpush3.bf16.msra.mxu0 %v469_v13 }
  0x33   :  { %434 = vmatprep.subr.bf16.mxu0 %v557_v0 }
  0x35   :  { %419 = vmatpush3.bf16.msra.mxu1 %v464_v8 }
  0x36   :  { %420 = vmatprep.subr.bf16.mxu1 %v557_v0  ;;  %435 = vmatpush3.bf16.msra.mxu0 %v470_v14 }
  0x37   :  { %436 = vmatprep.subr.bf16.mxu0 %v557_v0 }
  0x39   :  { %421 = vmatpush3.bf16.msra.mxu1 %v465_v9 }
  0x3a   :  { %422 = vmatprep.subr.bf16.mxu1 %v557_v0  ;;  %437 = vmatpush3.bf16.msra.mxu0 %v471_v15 }
  0x3b   :  { %438 = vmatprep.subr.bf16.mxu0 %v557_v0 }
  0x3d   :  { %423 = vmatpush3.bf16.msra.mxu1 %v466_v10 }
  0x3e   :  { %424 = vmatprep.subr.bf16.mxu1 %v557_v0  ;;  %439 = vmatpush3.bf16.msra.mxu0 %v472_v16 }
  0x3f   :  { %440 = vmatprep.subr.bf16.mxu0 %v557_v0 }
  0x41   :  { %425 = vmatpush3.bf16.msra.mxu1 %v467_v11 }
  0x42   :  { %426 = vmatprep.subr.bf16.mxu1 %v557_v0  ;;  %441 = vmatpush3.bf16.msra.mxu0 %v473_v25 }
  0x43   :  { %442 = vmatprep.subr.bf16.mxu0 %v557_v0 }
  0x45   :  { %427 = vmatpush3.bf16.msra.mxu1 %v468_v12 }
  0x46   :  { %443 = vmatpush3.bf16.msra.mxu0 %v474_v26 }
  0x47   :  { %444 = vmatprep.subr.bf16.mxu0 %v557_v0 }
  0x4a   :  { %445 = vmatpush3.bf16.msra.mxu0 %v475_v27 }
  0x4b   :  { %446 = vmatprep.subr.bf16.mxu0 %v557_v0 }
  0x4e   :  { %447 = vmatpush3.bf16.msra.mxu0 %v476_v28 }
 0x103   :  { %v105_v18 = vpop.f32.mrb[0].mxu0 }
 0x104   :  { %v106_v19 = vadd.f32 %v359_v17, %v105_v18  ;;  %v410_v20 = vpop.f32.mrb[1].mxu0 }
 0x105   :  { %v108_v21 = vpop.f32.mrb[2].mxu0 }
 0x106   :  { %v111_v22 = vpack.c.bf16 %v106_v19, %v106_v19  ;;  %v411_v23 = vpop.f32.mrb[3].mxu0 }
 0x108   :  { %477 = vtanh.bf16 %v111_v22 }
 0x113   :  { %v478_v24 = vpop.eup %477 }
 0x114   :  { %429 = vmatmul.mubr.bf16.vlgmr.msra.gmra.mrb[0].mxu1 %v478_v24 }
 0x1e7   :  { %v220_v30 = vpop.f32.mrb[0].mxu1 }
 0x1e8   :  { %v221_v31 = vadd.f32 %v364_v29, %v220_v30  ;;  %v430_v32 = vpop.f32.mrb[1].mxu1 }
 0x1e9   :  { %v223_v33 = vpop.f32.mrb[2].mxu1 }
 0x1ea   :  { %v226_v34 = vpack.c.bf16 %v221_v31, %v221_v31  ;;  %v431_v35 = vpop.f32.mrb[3].mxu1 }
 0x1ec   :  { %479 = vtanh.bf16 %v226_v34 }
 0x1f7   :  { %v480_v36 = vpop.eup %479 }
 0x1f8   :  { %449 = vmatmul.mubr.bf16.vlgmr.msra.gmra.mrb[4].mxu0 %v480_v36 }
 0x2cb   :  { %v335_v38 = vpop.f32.mrb[4].mxu0 }
 0x2cc   :  { %v336_v39 = vadd.f32 %v374_v37, %v335_v38  ;;  %v450_v40 = vpop.f32.mrb[5].mxu0 }
 0x2cd   :  { %v338_v41 = vpop.f32.mrb[6].mxu0 }
 0x2ce   :  { %v451_v42 = vpop.f32.mrb[7].mxu0  ;;  %342 = vst.msk [vmem:[#allocation7] sm:$0xff] %vm341_vm2, %v336_v39 }
 0x2cf   :  { %536 = shalt.err (!%p533_p6)
}
 0x2d0   :  { %s537_s2 = scalar_lea.hbm %s659_s3, 128 }
 0x2d1   :  { %p538_p7 = scmp.ne.s32.totalorder %s659_s3, %s537_s2  ;;  %p541_p8 = scmp.lt.u32.totalorder %s537_s2, %s659_s3 }
 0x2d3   :  { %p543_p9 = pnand %p541_p8, %p538_p7 }
 0x2d5   :  { %546 = shalt.err (!%p543_p9)
}
 0x2d6   :  { %352 = dma.vmem_to_hbm [thread:$0]  %s350_s16, 128, %s659_s3, [#allocation4]  }
 0x2d7   :  { %551 = dma.done.wait [#allocation4], 128  }
 0x2d8   :  { %552 = vsyncadd [#allocation4], 4294967168 }
 0x2d9   :  { %356 = vsyncpa [#allocation3], 1 }
 0x2da   :  { %357 = vsyncpa [#allocation6], 1 }
 0x2db   :  { %358 = vsyncpa [#allocation4], 1 }

</bundles_post_ra>
